<compile_context>
chip_gen: v6e
topology: v6e:2x2x1
jax: 0.10.0
libtpu: 0.0.40
codegen_flags: <defaults>
</compile_context>

<pallas_src>
import functools

import jax
import jax.numpy as jnp
from jax import lax
from jax.experimental import pallas as pl
from jax.experimental.pallas import tpu as pltpu

EPS = 1e-5


def basic_block_kernel(x_ref, t1_ref, t2_ref, g1_ref, b1_ref, g2_ref, b2_ref,
                       o_ref, *, H, W, C, eps, mxu_dtype):
    """Fused conv3x3 -> BN -> ReLU -> conv3x3 -> BN -> (+x) -> ReLU.

    x_ref  : (N*H, W*C)      lane-dense activations (NHWC rows packed on lanes)
    t*_ref : (3*W*C, W*C)    stacked block-Toeplitz conv weights (dy along K)
    g*/b*  : (1, W*C)        BN affine params pre-tiled over the W lane groups
    o_ref  : (N*H, W*C)
    """
    NH, WC = x_ref.shape
    f32 = jnp.float32

    x2 = x_ref[...].astype(f32)

    # Boundary-row masks for the dy = -1 / +1 halos: the cyclic sublane roll
    # must not leak across image edges or between images stacked along N*H.
    row_h = lax.broadcasted_iota(jnp.int32, (NH, WC), 0) % H
    not_top = row_h != 0
    not_bottom = row_h != H - 1

    def conv3x3(a, t_ref):
        # dy halos: XLU sublane roll + VPU mask (no MXU permutation matmuls).
        up = jnp.where(not_top, pltpu.roll(a, 1, 0), 0.0)          # row h-1
        down = jnp.where(not_bottom, pltpu.roll(a, NH - 1, 0), 0.0)  # row h+1
        # One K = 3*W*C matmul per conv; dx taps + width padding live in the
        # block-Toeplitz weight.  Operands in mxu_dtype, accumulate in f32.
        lhs = jnp.concatenate([up, a, down], axis=1).astype(mxu_dtype)
        return jnp.dot(lhs, t_ref[...], preferred_element_type=f32)

    inv_m = 1.0 / float(NH * W)      # samples per channel = N*H*W

    def allsum_lane_groups(s):
        # (1, W*C): cyclic butterfly over the W lane groups; result holds the
        # per-channel total broadcast back over every lane group.
        # Requires W to be a power of two (asserted in the wrapper).
        shift = C
        while shift < WC:
            s = s + pltpu.roll(s, shift, 1)
            shift *= 2
        return s

    def batch_norm(z, gamma, beta):
        # One-pass training-mode batch statistics (biased variance).
        s1 = allsum_lane_groups(jnp.sum(z, axis=0, keepdims=True))
        s2 = allsum_lane_groups(jnp.sum(z * z, axis=0, keepdims=True))
        mean = s1 * inv_m
        var = jnp.maximum(s2 * inv_m - mean * mean, 0.0)   # clamp f32 cancellation
        scale = lax.rsqrt(var + eps) * gamma
        return (z - mean) * scale + beta

    g1 = g1_ref[...].astype(f32)
    b1 = b1_ref[...].astype(f32)
    g2 = g2_ref[...].astype(f32)
    b2 = b2_ref[...].astype(f32)

    h1 = jnp.maximum(batch_norm(conv3x3(x2, t1_ref), g1, b1), 0.0)
    h2 = batch_norm(conv3x3(h1, t2_ref), g2, b2)
    o_ref[...] = jnp.maximum(h2 + x2, 0.0).astype(o_ref.dtype)


def _toeplitz_weights(w_hwio, W):
    """(3, 3, Cin, Cout) HWIO -> (3*W*Cin, W*Cout) stacked block-Toeplitz weight.

    T[dy*W*Cin + w'*Cin + ci, w*Cout + co] = w_hwio[dy, w' - w + 1, ci, co]
    when |w' - w| <= 1 and 0 otherwise: dx taps and the zero padding along W
    are folded into the weight; dy taps are stacked along K.
    """
    _, _, Cin, Cout = w_hwio.shape
    wp = jnp.arange(W)[:, None]          # input (source) w index  w'
    wo = jnp.arange(W)[None, :]          # output w index          w
    d = wp - wo + 1                      # dx tap index
    valid = ((d >= 0) & (d < 3)).astype(w_hwio.dtype)
    blocks = w_hwio[:, jnp.clip(d, 0, 2)] * valid[None, :, :, None, None]
    # (3, W, W, Cin, Cout) -> (3, W, Cin, W, Cout) -> (3*W*Cin, W*Cout)
    return blocks.transpose(0, 1, 3, 2, 4).reshape(3 * W * Cin, W * Cout)


def _vmem_limit_bytes(io_bytes):
    # Cap relative to the chip (v7x has only 64 MiB/TC), leaving ~25% headroom.
    try:
        cap = int(pltpu.get_tpu_info().vmem_capacity_bytes)
    except Exception:
        cap = 64 << 20
    return min(int(4 * io_bytes) + (8 << 20), int(0.75 * cap))


def basic_block_pallas(x, w1, g1, b1, w2, g2, b2, *, mxu_dtype=jnp.bfloat16):
    """x: (N, H, W, C) NHWC.  w1/w2: (3, 3, C, C) HWIO.  g/b: (C,).

    mxu_dtype: dtype of the conv matmul operands (default bfloat16; f32
    accumulation either way).  All elementwise/BN math stays float32.
    """
    N, H, W, C = x.shape
    NH, WC = N * H, W * C
    assert W & (W - 1) == 0, "lane-group butterfly reduction needs power-of-two W"

    # Lane-dense slabs: activations as (N*H, W*C) rows, weights as stacked Toeplitz.
    x2 = x.reshape(NH, WC)
    t1 = _toeplitz_weights(w1, W).astype(mxu_dtype)
    t2 = _toeplitz_weights(w2, W).astype(mxu_dtype)
    g1t = jnp.tile(g1.astype(jnp.float32), W).reshape(1, WC)
    b1t = jnp.tile(b1.astype(jnp.float32), W).reshape(1, WC)
    g2t = jnp.tile(g2.astype(jnp.float32), W).reshape(1, WC)
    b2t = jnp.tile(b2.astype(jnp.float32), W).reshape(1, WC)

    args = (x2, t1, t2, g1t, b1t, g2t, b2t)
    io_bytes = (sum(int(a.size) * a.dtype.itemsize for a in args)
                + NH * WC * x.dtype.itemsize)

    cost = pl.CostEstimate(
        flops=2 * (2 * NH * (3 * WC) * WC)   # two stacked-K conv matmuls
              + 24 * NH * WC,                # BN stats / scale-shift / ReLU / residual
        transcendentals=2 * WC,              # two rsqrt passes
        bytes_accessed=io_bytes,
    )

    kernel = functools.partial(basic_block_kernel, H=H, W=W, C=C, eps=EPS,
                               mxu_dtype=mxu_dtype)
    vmem = pl.BlockSpec(memory_space=pltpu.MemorySpace.VMEM)

    out2 = pl.pallas_call(
        kernel,
        out_shape=jax.ShapeDtypeStruct((NH, WC), x.dtype),
        in_specs=[vmem] * len(args),
        out_specs=vmem,
        input_output_aliases={0: 0},         # output slab reuses the x2 buffer
        compiler_params=pltpu.CompilerParams(
            vmem_limit_bytes=_vmem_limit_bytes(io_bytes)),
        cost_estimate=cost,
    )(*args)
    return out2.reshape(N, H, W, C)


# ----------------------------- pure-JAX reference -----------------------------
def _bn_ref(z, gamma, beta):
    mean = jnp.mean(z, axis=(0, 1, 2), keepdims=True)
    var = jnp.mean((z - mean) ** 2, axis=(0, 1, 2), keepdims=True)
    return (z - mean) * lax.rsqrt(var + EPS) * gamma + beta


def basic_block_ref(x, w1, g1, b1, w2, g2, b2):
    dn = ('NHWC', 'HWIO', 'NHWC')
    z1 = lax.conv_general_dilated(x, w1, (1, 1), 'SAME', dimension_numbers=dn)
    h1 = jnp.maximum(_bn_ref(z1, g1, b1), 0.0)
    z2 = lax.conv_general_dilated(h1, w2, (1, 1), 'SAME', dimension_numbers=dn)
    h2 = _bn_ref(z2, g2, b2)
    return jnp.maximum(h2 + x, 0.0)


if __name__ == "__main__":
    # TODO(synk): running_mean/running_var momentum updates of BatchWeightNorm2d
    # are a training-time side effect and do not affect the forward output
    # (batch stats are used for normalization either way); omitted.
    N, H, W, C = 2, 16, 16, 8          # NHWC  (== NCHW (2, 8, 16, 16)); W*C = 128

    key = jax.random.PRNGKey(0)
    kx, kw1, kw2, kg1, kb1, kg2, kb2 = jax.random.split(key, 7)

    x = jax.random.normal(kx, (N, H, W, C), jnp.float32)
    w1 = jax.random.normal(kw1, (3, 3, C, C), jnp.float32) * 0.1
    w2 = jax.random.normal(kw2, (3, 3, C, C), jnp.float32) * 0.1
    g1 = 1.0 + 0.1 * jax.random.normal(kg1, (C,), jnp.float32)
    b1 = 0.1 * jax.random.normal(kb1, (C,), jnp.float32)
    g2 = 1.0 + 0.1 * jax.random.normal(kg2, (C,), jnp.float32)
    b2 = 0.1 * jax.random.normal(kb2, (C,), jnp.float32)

    ref = jax.block_until_ready(basic_block_ref(x, w1, g1, b1, w2, g2, b2))

    # f32 MXU operands: bitwise-conservative path, strict tolerance.
    run_f32 = jax.jit(functools.partial(basic_block_pallas, mxu_dtype=jnp.float32))
    out_f32 = jax.block_until_ready(run_f32(x, w1, g1, b1, w2, g2, b2))
    assert out_f32.shape == (N, H, W, C)
    err_f32 = float(jnp.max(jnp.abs(out_f32 - ref)))
    assert jnp.allclose(out_f32, ref, atol=1e-3, rtol=1e-3), \
        f"f32 max abs err {err_f32}"

    # Default bf16 MXU operands (f32 accumulation): looser numerics tolerance.
    run_bf16 = jax.jit(functools.partial(basic_block_pallas, mxu_dtype=jnp.bfloat16))
    out_bf16 = jax.block_until_ready(run_bf16(x, w1, g1, b1, w2, g2, b2))
    err_bf16 = float(jnp.max(jnp.abs(out_bf16 - ref)))
    assert jnp.allclose(out_bf16, ref, atol=5e-2, rtol=5e-2), \
        f"bf16 max abs err {err_bf16}"

    print("KERNEL_OK")
</pallas_src>

<mosaic_0001>
module attributes {stable_mosaic.version = 11 : i64} {
  func.func @basic_block_kernel(%arg0: memref<32x128xf32, #tpu.memory_space<vmem>>, %arg1: memref<384x128xf32, #tpu.memory_space<vmem>>, %arg2: memref<384x128xf32, #tpu.memory_space<vmem>>, %arg3: memref<1x128xf32, #tpu.memory_space<vmem>>, %arg4: memref<1x128xf32, #tpu.memory_space<vmem>>, %arg5: memref<1x128xf32, #tpu.memory_space<vmem>>, %arg6: memref<1x128xf32, #tpu.memory_space<vmem>>, %arg7: memref<32x128xf32, #tpu.memory_space<vmem>>) attributes {dimension_semantics = [], scalar_prefetch = 0 : i64, scratch_operands = 0 : i64, tpu.core_type = #tpu.core_type<tc>} {
    %c0 = arith.constant 0 : index
    %c0_0 = arith.constant 0 : index
    %0 = vector.load %arg0[%c0, %c0_0] : memref<32x128xf32, #tpu.memory_space<vmem>>, vector<32x128xf32>
    %1 = tpu.iota {dimensions = array<i32: 0>} : vector<32x128xi32>
    %c16_i32 = arith.constant 16 : i32
    %c0_i32 = arith.constant 0 : i32
    %2 = arith.cmpi eq, %c16_i32, %c0_i32 : i32
    %c1_i32 = arith.constant 1 : i32
    %3 = arith.select %2, %c1_i32, %c16_i32 : i32
    %4 = vector.broadcast %3 : i32 to vector<32x128xi32>
    %5 = arith.remsi %1, %4 : vector<32x128xi32>
    %c0_i32_1 = arith.constant 0 : i32
    %6 = vector.broadcast %c0_i32_1 : i32 to vector<32x128xi32>
    %7 = arith.cmpi ne, %5, %6 : vector<32x128xi32>
    %c0_i32_2 = arith.constant 0 : i32
    %8 = vector.broadcast %c0_i32_2 : i32 to vector<32x128xi32>
    %9 = arith.cmpi slt, %5, %8 : vector<32x128xi32>
    %c0_i32_3 = arith.constant 0 : i32
    %10 = arith.cmpi slt, %3, %c0_i32_3 : i32
    %11 = vector.broadcast %10 : i1 to vector<32x128xi1>
    %12 = vector.broadcast %11 : vector<32x128xi1> to vector<32x128xi1>
    %13 = arith.xori %9, %12 : vector<32x128xi1>
    %14 = arith.andi %13, %7 : vector<32x128xi1>
    %15 = vector.broadcast %3 : i32 to vector<32x128xi32>
    %16 = arith.addi %5, %15 : vector<32x128xi32>
    %17 = arith.select %14, %16, %5 : vector<32x128xi1>, vector<32x128xi32>
    %c0_i32_4 = arith.constant 0 : i32
    %18 = vector.broadcast %c0_i32_4 : i32 to vector<32x128xi32>
    %19 = arith.cmpi ne, %17, %18 : vector<32x128xi32>
    %c15_i32 = arith.constant 15 : i32
    %20 = vector.broadcast %c15_i32 : i32 to vector<32x128xi32>
    %21 = arith.cmpi ne, %17, %20 : vector<32x128xi32>
    %c0_5 = arith.constant 0 : index
    %c0_6 = arith.constant 0 : index
    %22 = vector.load %arg3[%c0_5, %c0_6] : memref<1x128xf32, #tpu.memory_space<vmem>>, vector<1x128xf32>
    %c0_7 = arith.constant 0 : index
    %c0_8 = arith.constant 0 : index
    %23 = vector.load %arg4[%c0_7, %c0_8] : memref<1x128xf32, #tpu.memory_space<vmem>>, vector<1x128xf32>
    %c0_9 = arith.constant 0 : index
    %c0_10 = arith.constant 0 : index
    %24 = vector.load %arg5[%c0_9, %c0_10] : memref<1x128xf32, #tpu.memory_space<vmem>>, vector<1x128xf32>
    %c0_11 = arith.constant 0 : index
    %c0_12 = arith.constant 0 : index
    %25 = vector.load %arg6[%c0_11, %c0_12] : memref<1x128xf32, #tpu.memory_space<vmem>>, vector<1x128xf32>
    %c1_i32_13 = arith.constant 1 : i32
    %26 = tpu.dynamic_rotate %0 by %c1_i32_13 dim 0 : vector<32x128xf32>, i32 -> vector<32x128xf32>
    %cst = arith.constant 0.000000e+00 : f32
    %27 = vector.broadcast %cst : f32 to vector<32x128xf32>
    %28 = arith.select %19, %26, %27 : vector<32x128xi1>, vector<32x128xf32>
    %c31_i32 = arith.constant 31 : i32
    %29 = tpu.dynamic_rotate %0 by %c31_i32 dim 0 : vector<32x128xf32>, i32 -> vector<32x128xf32>
    %cst_14 = arith.constant 0.000000e+00 : f32
    %30 = vector.broadcast %cst_14 : f32 to vector<32x128xf32>
    %31 = arith.select %21, %29, %30 : vector<32x128xi1>, vector<32x128xf32>
    %32 = tpu.concatenate %28, %0, %31 in 1 : vector<32x128xf32>, vector<32x128xf32>, vector<32x128xf32> -> vector<32x384xf32>
    %c0_15 = arith.constant 0 : index
    %c0_16 = arith.constant 0 : index
    %33 = vector.load %arg1[%c0_15, %c0_16] : memref<384x128xf32, #tpu.memory_space<vmem>>, vector<384x128xf32>
    %cst_17 = arith.constant dense<0.000000e+00> : vector<32x128xf32>
    %34 = tpu.matmul %32, %33, %cst_17 {dimension_numbers = #tpu.dot_dimension_numbers<[1], [0], [0], [1], [0, 0, 1, 1], [], []>} : vector<32x384xf32>, vector<384x128xf32>, vector<32x128xf32> -> vector<32x128xf32>
    %cst_18 = arith.constant dense<0.000000e+00> : vector<128xf32>
    %35 = vector.multi_reduction <add>, %34, %cst_18 [0] : vector<32x128xf32> to vector<128xf32>
    %36 = vector.shape_cast %35 : vector<128xf32> to vector<1x128xf32>
    %c8_i32 = arith.constant 8 : i32
    %37 = tpu.dynamic_rotate %36 by %c8_i32 dim 1 : vector<1x128xf32>, i32 -> vector<1x128xf32>
    %38 = arith.addf %36, %37 : vector<1x128xf32>
    %c16_i32_19 = arith.constant 16 : i32
    %39 = tpu.dynamic_rotate %38 by %c16_i32_19 dim 1 : vector<1x128xf32>, i32 -> vector<1x128xf32>
    %40 = arith.addf %38, %39 : vector<1x128xf32>
    %c32_i32 = arith.constant 32 : i32
    %41 = tpu.dynamic_rotate %40 by %c32_i32 dim 1 : vector<1x128xf32>, i32 -> vector<1x128xf32>
    %42 = arith.addf %40, %41 : vector<1x128xf32>
    %c64_i32 = arith.constant 64 : i32
    %43 = tpu.dynamic_rotate %42 by %c64_i32 dim 1 : vector<1x128xf32>, i32 -> vector<1x128xf32>
    %44 = arith.addf %42, %43 : vector<1x128xf32>
    %45 = arith.mulf %34, %34 : vector<32x128xf32>
    %cst_20 = arith.constant dense<0.000000e+00> : vector<128xf32>
    %46 = vector.multi_reduction <add>, %45, %cst_20 [0] : vector<32x128xf32> to vector<128xf32>
    %47 = vector.shape_cast %46 : vector<128xf32> to vector<1x128xf32>
    %c8_i32_21 = arith.constant 8 : i32
    %48 = tpu.dynamic_rotate %47 by %c8_i32_21 dim 1 : vector<1x128xf32>, i32 -> vector<1x128xf32>
    %49 = arith.addf %47, %48 : vector<1x128xf32>
    %c16_i32_22 = arith.constant 16 : i32
    %50 = tpu.dynamic_rotate %49 by %c16_i32_22 dim 1 : vector<1x128xf32>, i32 -> vector<1x128xf32>
    %51 = arith.addf %49, %50 : vector<1x128xf32>
    %c32_i32_23 = arith.constant 32 : i32
    %52 = tpu.dynamic_rotate %51 by %c32_i32_23 dim 1 : vector<1x128xf32>, i32 -> vector<1x128xf32>
    %53 = arith.addf %51, %52 : vector<1x128xf32>
    %c64_i32_24 = arith.constant 64 : i32
    %54 = tpu.dynamic_rotate %53 by %c64_i32_24 dim 1 : vector<1x128xf32>, i32 -> vector<1x128xf32>
    %55 = arith.addf %53, %54 : vector<1x128xf32>
    %cst_25 = arith.constant 0.001953125 : f32
    %56 = vector.broadcast %cst_25 : f32 to vector<1x128xf32>
    %57 = arith.mulf %44, %56 : vector<1x128xf32>
    %cst_26 = arith.constant 0.001953125 : f32
    %58 = vector.broadcast %cst_26 : f32 to vector<1x128xf32>
    %59 = arith.mulf %55, %58 : vector<1x128xf32>
    %60 = arith.mulf %57, %57 : vector<1x128xf32>
    %61 = arith.subf %59, %60 : vector<1x128xf32>
    %cst_27 = arith.constant 0.000000e+00 : f32
    %62 = vector.broadcast %cst_27 : f32 to vector<1x128xf32>
    %63 = arith.maximumf %61, %62 : vector<1x128xf32>
    %cst_28 = arith.constant 9.99999974E-6 : f32
    %64 = vector.broadcast %cst_28 : f32 to vector<1x128xf32>
    %65 = arith.addf %63, %64 : vector<1x128xf32>
    %66 = math.rsqrt %65 : vector<1x128xf32>
    %67 = arith.mulf %66, %22 : vector<1x128xf32>
    %68 = vector.broadcast %57 : vector<1x128xf32> to vector<32x128xf32>
    %69 = arith.subf %34, %68 : vector<32x128xf32>
    %70 = vector.broadcast %67 : vector<1x128xf32> to vector<32x128xf32>
    %71 = arith.mulf %69, %70 : vector<32x128xf32>
    %72 = vector.broadcast %23 : vector<1x128xf32> to vector<32x128xf32>
    %73 = arith.addf %71, %72 : vector<32x128xf32>
    %cst_29 = arith.constant 0.000000e+00 : f32
    %74 = vector.broadcast %cst_29 : f32 to vector<32x128xf32>
    %75 = arith.maximumf %73, %74 : vector<32x128xf32>
    %c1_i32_30 = arith.constant 1 : i32
    %76 = tpu.dynamic_rotate %75 by %c1_i32_30 dim 0 : vector<32x128xf32>, i32 -> vector<32x128xf32>
    %cst_31 = arith.constant 0.000000e+00 : f32
    %77 = vector.broadcast %cst_31 : f32 to vector<32x128xf32>
    %78 = arith.select %19, %76, %77 : vector<32x128xi1>, vector<32x128xf32>
    %c31_i32_32 = arith.constant 31 : i32
    %79 = tpu.dynamic_rotate %75 by %c31_i32_32 dim 0 : vector<32x128xf32>, i32 -> vector<32x128xf32>
    %cst_33 = arith.constant 0.000000e+00 : f32
    %80 = vector.broadcast %cst_33 : f32 to vector<32x128xf32>
    %81 = arith.select %21, %79, %80 : vector<32x128xi1>, vector<32x128xf32>
    %82 = tpu.concatenate %78, %75, %81 in 1 : vector<32x128xf32>, vector<32x128xf32>, vector<32x128xf32> -> vector<32x384xf32>
    %c0_34 = arith.constant 0 : index
    %c0_35 = arith.constant 0 : index
    %83 = vector.load %arg2[%c0_34, %c0_35] : memref<384x128xf32, #tpu.memory_space<vmem>>, vector<384x128xf32>
    %cst_36 = arith.constant dense<0.000000e+00> : vector<32x128xf32>
    %84 = tpu.matmul %82, %83, %cst_36 {dimension_numbers = #tpu.dot_dimension_numbers<[1], [0], [0], [1], [0, 0, 1, 1], [], []>} : vector<32x384xf32>, vector<384x128xf32>, vector<32x128xf32> -> vector<32x128xf32>
    %cst_37 = arith.constant dense<0.000000e+00> : vector<128xf32>
    %85 = vector.multi_reduction <add>, %84, %cst_37 [0] : vector<32x128xf32> to vector<128xf32>
    %86 = vector.shape_cast %85 : vector<128xf32> to vector<1x128xf32>
    %c8_i32_38 = arith.constant 8 : i32
    %87 = tpu.dynamic_rotate %86 by %c8_i32_38 dim 1 : vector<1x128xf32>, i32 -> vector<1x128xf32>
    %88 = arith.addf %86, %87 : vector<1x128xf32>
    %c16_i32_39 = arith.constant 16 : i32
    %89 = tpu.dynamic_rotate %88 by %c16_i32_39 dim 1 : vector<1x128xf32>, i32 -> vector<1x128xf32>
    %90 = arith.addf %88, %89 : vector<1x128xf32>
    %c32_i32_40 = arith.constant 32 : i32
    %91 = tpu.dynamic_rotate %90 by %c32_i32_40 dim 1 : vector<1x128xf32>, i32 -> vector<1x128xf32>
    %92 = arith.addf %90, %91 : vector<1x128xf32>
    %c64_i32_41 = arith.constant 64 : i32
    %93 = tpu.dynamic_rotate %92 by %c64_i32_41 dim 1 : vector<1x128xf32>, i32 -> vector<1x128xf32>
    %94 = arith.addf %92, %93 : vector<1x128xf32>
    %95 = arith.mulf %84, %84 : vector<32x128xf32>
    %cst_42 = arith.constant dense<0.000000e+00> : vector<128xf32>
    %96 = vector.multi_reduction <add>, %95, %cst_42 [0] : vector<32x128xf32> to vector<128xf32>
    %97 = vector.shape_cast %96 : vector<128xf32> to vector<1x128xf32>
    %c8_i32_43 = arith.constant 8 : i32
    %98 = tpu.dynamic_rotate %97 by %c8_i32_43 dim 1 : vector<1x128xf32>, i32 -> vector<1x128xf32>
    %99 = arith.addf %97, %98 : vector<1x128xf32>
    %c16_i32_44 = arith.constant 16 : i32
    %100 = tpu.dynamic_rotate %99 by %c16_i32_44 dim 1 : vector<1x128xf32>, i32 -> vector<1x128xf32>
    %101 = arith.addf %99, %100 : vector<1x128xf32>
    %c32_i32_45 = arith.constant 32 : i32
    %102 = tpu.dynamic_rotate %101 by %c32_i32_45 dim 1 : vector<1x128xf32>, i32 -> vector<1x128xf32>
    %103 = arith.addf %101, %102 : vector<1x128xf32>
    %c64_i32_46 = arith.constant 64 : i32
    %104 = tpu.dynamic_rotate %103 by %c64_i32_46 dim 1 : vector<1x128xf32>, i32 -> vector<1x128xf32>
    %105 = arith.addf %103, %104 : vector<1x128xf32>
    %cst_47 = arith.constant 0.001953125 : f32
    %106 = vector.broadcast %cst_47 : f32 to vector<1x128xf32>
    %107 = arith.mulf %94, %106 : vector<1x128xf32>
    %cst_48 = arith.constant 0.001953125 : f32
    %108 = vector.broadcast %cst_48 : f32 to vector<1x128xf32>
    %109 = arith.mulf %105, %108 : vector<1x128xf32>
    %110 = arith.mulf %107, %107 : vector<1x128xf32>
    %111 = arith.subf %109, %110 : vector<1x128xf32>
    %cst_49 = arith.constant 0.000000e+00 : f32
    %112 = vector.broadcast %cst_49 : f32 to vector<1x128xf32>
    %113 = arith.maximumf %111, %112 : vector<1x128xf32>
    %cst_50 = arith.constant 9.99999974E-6 : f32
    %114 = vector.broadcast %cst_50 : f32 to vector<1x128xf32>
    %115 = arith.addf %113, %114 : vector<1x128xf32>
    %116 = math.rsqrt %115 : vector<1x128xf32>
    %117 = arith.mulf %116, %24 : vector<1x128xf32>
    %118 = vector.broadcast %107 : vector<1x128xf32> to vector<32x128xf32>
    %119 = arith.subf %84, %118 : vector<32x128xf32>
    %120 = vector.broadcast %117 : vector<1x128xf32> to vector<32x128xf32>
    %121 = arith.mulf %119, %120 : vector<32x128xf32>
    %122 = vector.broadcast %25 : vector<1x128xf32> to vector<32x128xf32>
    %123 = arith.addf %121, %122 : vector<32x128xf32>
    %124 = arith.addf %123, %0 : vector<32x128xf32>
    %cst_51 = arith.constant 0.000000e+00 : f32
    %125 = vector.broadcast %cst_51 : f32 to vector<32x128xf32>
    %126 = arith.maximumf %124, %125 : vector<32x128xf32>
    %c0_52 = arith.constant 0 : index
    %c0_53 = arith.constant 0 : index
    %127 = vector.load %arg7[%c0_52, %c0_53] : memref<32x128xf32, #tpu.memory_space<vmem>>, vector<32x128xf32>
    tpu.vector_store %arg7[%c0_52, %c0_53], %126 {strides = array<i32>} : memref<32x128xf32, #tpu.memory_space<vmem>>, vector<32x128xf32>,
    return
  }
}

</mosaic_0001>

<bundles_post_ra>
// kernel: tile.23
= control target key start
LH: loop header
LB: loop body
LE: loop exit
PB: predicated region body
PF: predicated region fallthrough
CT: control target
= control target key end

     0   :  { %s28_s0 = inlined_call_operand.vmem [shape: f32[8], index: 0, kind: input, shape index: {}]   ;;  %s29_s1 = inlined_call_operand.vmem [shape: f32[16,8], index: 1, kind: output, shape index: {}]  }
   0x1   :  { %v4_v0 = vld [vmem:[%s28_s0] ss:$0 sm:$0xff] }
   0x2   :  { %5 = vst [vmem:[%s29_s1] sm:$0xff] %v4_v0  ;;  %8 = vst [vmem:[%s29_s1 + $0x8] sm:$0xff] %v4_v0 }

// kernel: tile.24
= control target key start
LH: loop header
LB: loop body
LE: loop exit
PB: predicated region body
PF: predicated region fallthrough
CT: control target
= control target key end

     0   :  { %s133_s10 = smov 120   ;;  %s134_s11 = smov 104   ;;  %vm3_vm0 = vcmask 64512   ;;  %vm9_vm1 = vcmask 1048512   ;;  %vm15_vm2 = vcmask 982912   ;;  %vm21_vm3 = vcmask 917312   ;;  %s209_s0 = inlined_call_operand.vmem [shape: f32[16,8], index: 0, kind: input, shape index: {}]   ;;  %s210_s1 = inlined_call_operand.vmem [shape: f32[1,128], index: 1, kind: output, shape index: {}]  }
   0x1   :  { %v103_v0 = vld [vmem:[%s209_s0 + $0xf] sm:$0x1]   ;;  %v105_v1 = vld [vmem:[%s209_s0 + $0xd] sm:$0x1]   ;;  %v104_v2 = vld [vmem:[%s209_s0 + $0xe] sm:$0x1]  }
   0x2   :  { %7 = vrot.lane.b32.xlu0 %v103_v0, %s133_s10  ;;  %19 = vrot.lane.b32.xlu1 %v105_v1, %s134_s11  ;;  %v106_v3 = vld [vmem:[%s209_s0 + $0xc] sm:$0x1]   ;;  %s135_s16 = smov 112   ;;  %s136_s17 = smov 96   ;;  %v107_v4 = vld [vmem:[%s209_s0 + $0xb] sm:$0x1]  }
   0x3   :  { %v108_v5 = vld [vmem:[%s209_s0 + $0xa] sm:$0x1]   ;;  %v2_v6 = vld [vmem:[%s209_s0] sm:$0x1]   ;;  %s137_s24 = smov 88   ;;  %s138_s25 = smov 80  }
   0x4   :  { %4 = vst.msk [vmem:[#allocation0] sm:$0x1] %vm3_vm0, %v2_v6   ;;  %v109_v7 = vld [vmem:[%s209_s0 + $0x9] sm:$0x1]   ;;  %v110_v8 = vld [vmem:[%s209_s0 + $0x8] sm:$0x1]  }
   0x5   :  { %s139_s30 = smov 72   ;;  %s140_s2 = smov 64   ;;  %v111_v9 = vld [vmem:[%s209_s0 + $0x7] sm:$0x1]   ;;  %v112_v10 = vld [vmem:[%s209_s0 + $0x6] sm:$0x1]  }
   0x6   :  { %13 = vrot.lane.b32.xlu0 %v104_v2, %s135_s16  ;;  %25 = vrot.lane.b32.xlu1 %v106_v3, %s136_s17  ;;  %s141_s7 = smov 56   ;;  %s142_s8 = smov 48   ;;  %v113_v11 = vld [vmem:[%s209_s0 + $0x5] sm:$0x1]   ;;  %v114_v12 = vld [vmem:[%s209_s0 + $0x4] sm:$0x1]  }
   0x7   :  { %s143_s13 = smov 40   ;;  %s144_s14 = smov 32   ;;  %v115_v13 = vld [vmem:[%s209_s0 + $0x3] sm:$0x1]   ;;  %v116_v14 = vld [vmem:[%s209_s0 + $0x2] sm:$0x1]  }
   0x8   :  { %s145_s19 = smov 24   ;;  %s146_s20 = smov 16   ;;  %v117_v15 = vld [vmem:[%s209_s0 + $0x1] sm:$0x1]   ;;  %vm27_vm4 = vcmask 851712   ;;  %vm33_vm5 = vcmask 786112  }
   0x9   :  { %s147_s0 = smov 8   ;;  %vm39_vm6 = vcmask 720512   ;;  %vm45_vm7 = vcmask 654912   ;;  %vm51_vm8 = vcmask 589312   ;;  %vm57_vm9 = vcmask 523712  }
   0xa   :  { %31 = vrot.lane.b32.xlu0 %v107_v4, %s137_s24  ;;  %37 = vrot.lane.b32.xlu1 %v108_v5, %s138_s25  ;;  %vm63_vm10 = vcmask 458112   ;;  %vm69_vm11 = vcmask 392512   ;;  %vm75_vm12 = vcmask 326912   ;;  %vm81_vm13 = vcmask 261312  }
   0xb   :  { %vm87_vm14 = vcmask 195712   ;;  %vm93_vm15 = vcmask 130112  }
   0xe   :  { %43 = vrot.lane.b32.xlu0 %v109_v7, %s139_s30  ;;  %49 = vrot.lane.b32.xlu1 %v110_v8, %s140_s2 }
  0x12   :  { %55 = vrot.lane.b32.xlu0 %v111_v9, %s141_s7  ;;  %61 = vrot.lane.b32.xlu1 %v112_v10, %s142_s8 }
  0x16   :  { %67 = vrot.lane.b32.xlu0 %v113_v11, %s143_s13  ;;  %73 = vrot.lane.b32.xlu1 %v114_v12, %s144_s14 }
  0x1a   :  { %79 = vrot.lane.b32.xlu0 %v115_v13, %s145_s19  ;;  %85 = vrot.lane.b32.xlu1 %v116_v14, %s146_s20 }
  0x1e   :  { %91 = vrot.lane.b32.xlu0 %v117_v15, %s147_s0 }
  0x74   :  { %v8_v16 = vpop.permute.xlu0 %7   ;;  %v20_v17 = vpop.permute.xlu1 %19  }
  0x75   :  { %10 = vst.msk [vmem:[#allocation0] sm:$0x1] %vm9_vm1, %v8_v16  }
  0x78   :  { %v14_v18 = vpop.permute.xlu0 %13   ;;  %v26_v19 = vpop.permute.xlu1 %25  }
  0x79   :  { %16 = vst.msk [vmem:[#allocation0] sm:$0x1] %vm15_vm2, %v14_v18  }
  0x7a   :  { %22 = vst.msk [vmem:[#allocation0] sm:$0x1] %vm21_vm3, %v20_v17  }
  0x7b   :  { %28 = vst.msk [vmem:[#allocation0] sm:$0x1] %vm27_vm4, %v26_v19  }
  0x7c   :  { %v32_v20 = vpop.permute.xlu0 %31   ;;  %v38_v21 = vpop.permute.xlu1 %37  }
  0x7d   :  { %34 = vst.msk [vmem:[#allocation0] sm:$0x1] %vm33_vm5, %v32_v20  }
  0x7e   :  { %40 = vst.msk [vmem:[#allocation0] sm:$0x1] %vm39_vm6, %v38_v21  }
  0x80   :  { %v44_v22 = vpop.permute.xlu0 %43   ;;  %v50_v23 = vpop.permute.xlu1 %49  }
  0x81   :  { %46 = vst.msk [vmem:[#allocation0] sm:$0x1] %vm45_vm7, %v44_v22  }
  0x82   :  { %52 = vst.msk [vmem:[#allocation0] sm:$0x1] %vm51_vm8, %v50_v23  }
  0x84   :  { %v56_v24 = vpop.permute.xlu0 %55   ;;  %v62_v25 = vpop.permute.xlu1 %61  }
  0x85   :  { %58 = vst.msk [vmem:[#allocation0] sm:$0x1] %vm57_vm9, %v56_v24  }
  0x86   :  { %64 = vst.msk [vmem:[#allocation0] sm:$0x1] %vm63_vm10, %v62_v25  }
  0x88   :  { %v68_v26 = vpop.permute.xlu0 %67   ;;  %v74_v27 = vpop.permute.xlu1 %73  }
  0x89   :  { %70 = vst.msk [vmem:[#allocation0] sm:$0x1] %vm69_vm11, %v68_v26  }
  0x8a   :  { %76 = vst.msk [vmem:[#allocation0] sm:$0x1] %vm75_vm12, %v74_v27  }
  0x8c   :  { %v80_v28 = vpop.permute.xlu0 %79   ;;  %v86_v29 = vpop.permute.xlu1 %85  }
  0x8d   :  { %82 = vst.msk [vmem:[#allocation0] sm:$0x1] %vm81_vm13, %v80_v28  }
  0x8e   :  { %88 = vst.msk [vmem:[#allocation0] sm:$0x1] %vm87_vm14, %v86_v29  }
  0x90   :  { %v92_v30 = vpop.permute.xlu0 %91  }
  0x91   :  { %94 = vst.msk [vmem:[#allocation0] sm:$0x1] %vm93_vm15, %v92_v30  }
  0x98   :  { %v99_v31 = vld [vmem:[#allocation0] sm:$0x1] }
  0x99   :  { %102 = vst [vmem:[%s210_s1] sm:$0x1] %v99_v31 }

// kernel: basic_block_pallas.1
= control target key start
LH: loop header
LB: loop body
LE: loop exit
PB: predicated region body
PF: predicated region fallthrough
CT: control target
= control target key end

     0   :  { %v30_v28 = vlaneseq  ;;  %s984_s12 = smov 16   ;;  %s985_s13 = smov 32   ;;  %s1526_s1 = inlined_call_operand.vmem [shape: f32[384,128], index: 1, kind: input, shape index: {}]   ;;  %s1527_s0 = inlined_call_operand.vmem [shape: f32[32,128], index: 0, kind: input, shape index: {}, may-alias: {0,7}]   ;;  %s1528_s2 = inlined_call_operand.vmem [shape: f32[384,128], index: 2, kind: input, shape index: {}]   ;;  %s1529_s3 = inlined_call_operand.vmem [shape: f32[1,128], index: 3, kind: input, shape index: {}]   ;;  %s1530_s4 = inlined_call_operand.vmem [shape: f32[1,128], index: 4, kind: input, shape index: {}]   ;;  %s1531_s5 = inlined_call_operand.vmem [shape: f32[1,128], index: 5, kind: input, shape index: {}]   ;;  %s1532_s6 = inlined_call_operand.vmem [shape: f32[1,128], index: 6, kind: input, shape index: {}]   ;;  %s1533_s7 = inlined_call_operand.vmem [shape: f32[32,128], index: 7, kind: output, shape index: {}, may-alias: {0,7}]  }
   0x1   :  { %v152_v0 = vld [vmem:[%s1526_s1 + $0xf8] sm:$0xff]  ;;  %v151_v2 = vld [vmem:[%s1526_s1 + $0xf0] sm:$0xff]  ;;  %v150_v5 = vld [vmem:[%s1526_s1 + $0xe8] sm:$0xff] }
   0x2   :  { %v136_v1 = vld [vmem:[%s1526_s1 + $0x78] sm:$0xff]  ;;  %771 = vmatprep.subr.mxu0 %v152_v0  ;;  %v135_v4 = vld [vmem:[%s1526_s1 + $0x70] sm:$0xff]  ;;  %v134_v7 = vld [vmem:[%s1526_s1 + $0x68] sm:$0xff]  ;;  %v1129_v35 = vshrl.u32 %v30_v28, 7 }
   0x3   :  { %v168_v3 = vld [vmem:[%s1526_s1 + $0x178] sm:$0xff]  ;;  %772 = vmatpush3.msra.mxu0 %v136_v1  ;;  %v167_v6 = vld [vmem:[%s1526_s1 + $0x170] sm:$0xff]  ;;  %v166_v8 = vld [vmem:[%s1526_s1 + $0x168] sm:$0xff] }
   0x4   :  { %899 = vmatprep.subr.mxu1 %v168_v3  ;;  %773 = vmatprep.subr.mxu0 %v151_v2  ;;  %v149_v9 = vld [vmem:[%s1526_s1 + $0xe0] sm:$0xff]  ;;  %v148_v12 = vld [vmem:[%s1526_s1 + $0xd8] sm:$0xff]  ;;  %v147_v15 = vld [vmem:[%s1526_s1 + $0xd0] sm:$0xff]  ;;  %v32_v45 = vadd.s32 8, %v1129_v35  ;;  %v39_v50 = vand.u32 15, %v1129_v35  ;;  %vm99_vm0 = vcmp.lt.s32.totalorder %v1129_v35, 1 }
   0x5   :  { %900 = vmatpush3.msra.mxu1 %v168_v3  ;;  %774 = vmatpush3.msra.mxu0 %v135_v4  ;;  %v133_v10 = vld [vmem:[%s1526_s1 + $0x60] sm:$0xff]  ;;  %v132_v13 = vld [vmem:[%s1526_s1 + $0x58] sm:$0xff]  ;;  %v131_v16 = vld [vmem:[%s1526_s1 + $0x50] sm:$0xff]  ;;  %vm112_vm1 = vcmp.lt.s32.totalorder %v1129_v35, 7  ;;  %v34_v60 = vadd.s32 24, %v1129_v35  ;;  %v33_v3 = vadd.s32 16, %v1129_v35 }
   0x6   :  { %901 = vmatprep.subr.mxu1 %v167_v6  ;;  %775 = vmatprep.subr.mxu0 %v150_v5  ;;  %v165_v11 = vld [vmem:[%s1526_s1 + $0x160] sm:$0xff]  ;;  %v164_v14 = vld [vmem:[%s1526_s1 + $0x158] sm:$0xff]  ;;  %v163_v17 = vld [vmem:[%s1526_s1 + $0x150] sm:$0xff]  ;;  %v46_v58 = vand.u32 15, %v32_v45  ;;  %vm1201_vm2 = vcmp.ne.s32.totalorder %v39_v50, 0 }
   0x7   :  { %902 = vmatpush3.msra.mxu1 %v167_v6  ;;  %776 = vmatpush3.msra.mxu0 %v134_v7  ;;  %v146_v18 = vld [vmem:[%s1526_s1 + $0xc8] sm:$0xff]  ;;  %v145_v21 = vld [vmem:[%s1526_s1 + $0xc0] sm:$0xff]  ;;  %v144_v24 = vld [vmem:[%s1526_s1 + $0xb8] sm:$0xff]  ;;  %v60_v7 = vand.u32 15, %v34_v60 }
   0x8   :  { %903 = vmatprep.subr.mxu1 %v166_v8  ;;  %777 = vmatprep.subr.mxu0 %v149_v9  ;;  %v130_v19 = vld [vmem:[%s1526_s1 + $0x48] sm:$0xff]  ;;  %v129_v22 = vld [vmem:[%s1526_s1 + $0x40] sm:$0xff]  ;;  %v128_v25 = vld [vmem:[%s1526_s1 + $0x38] sm:$0xff]  ;;  %vm1215_vm3 = vcmp.ne.s32.totalorder %v46_v58, 15 }
   0x9   :  { %904 = vmatpush3.msra.mxu1 %v166_v8  ;;  %778 = vmatpush3.msra.mxu0 %v133_v10  ;;  %v162_v20 = vld [vmem:[%s1526_s1 + $0x148] sm:$0xff]  ;;  %v161_v23 = vld [vmem:[%s1526_s1 + $0x140] sm:$0xff]  ;;  %v160_v26 = vld [vmem:[%s1526_s1 + $0x138] sm:$0xff]  ;;  %v53_v10 = vand.u32 15, %v33_v3  ;;  %vm1231_vm4 = vcmp.ne.s32.totalorder %v60_v7, 15 }
   0xa   :  { %905 = vmatprep.subr.mxu1 %v165_v11  ;;  %779 = vmatprep.subr.mxu0 %v148_v12  ;;  %v143_v27 = vld [vmem:[%s1526_s1 + $0xb0] sm:$0xff]  ;;  %v142_v31 = vld [vmem:[%s1526_s1 + $0xa8] sm:$0xff]  ;;  %v141_v34 = vld [vmem:[%s1526_s1 + $0xa0] sm:$0xff] }
   0xb   :  { %906 = vmatpush3.msra.mxu1 %v165_v11  ;;  %780 = vmatpush3.msra.mxu0 %v132_v13  ;;  %v127_v29 = vld [vmem:[%s1526_s1 + $0x30] sm:$0xff]  ;;  %v126_v32 = vld [vmem:[%s1526_s1 + $0x28] sm:$0xff]  ;;  %v125_v36 = vld [vmem:[%s1526_s1 + $0x20] sm:$0xff]  ;;  %vm1238_vm5 = vcmp.ne.s32.totalorder %v53_v10, 0 }
   0xc   :  { %907 = vmatprep.subr.mxu1 %v164_v14  ;;  %781 = vmatprep.subr.mxu0 %v147_v15  ;;  %v159_v30 = vld [vmem:[%s1526_s1 + $0x130] sm:$0xff]  ;;  %v158_v33 = vld [vmem:[%s1526_s1 + $0x128] sm:$0xff]  ;;  %v157_v37 = vld [vmem:[%s1526_s1 + $0x120] sm:$0xff] }
   0xd   :  { %908 = vmatpush3.msra.mxu1 %v164_v14  ;;  %782 = vmatpush3.msra.mxu0 %v131_v16  ;;  %v140_v38 = vld [vmem:[%s1526_s1 + $0x98] sm:$0xff]  ;;  %v1149_v41 = vld [vmem:[%s1527_s0] sm:$0xff]  ;;  %v139_v43 = vld [vmem:[%s1526_s1 + $0x90] sm:$0xff] }
   0xe   :  { %909 = vmatprep.subr.mxu1 %v163_v17  ;;  %783 = vmatprep.subr.mxu0 %v146_v18  ;;  %v124_v39 = vld [vmem:[%s1526_s1 + $0x18] sm:$0xff]  ;;  %v1162_v44 = vld [vmem:[%s1527_s0 + $0x8] sm:$0xff]  ;;  %v123_v46 = vld [vmem:[%s1526_s1 + $0x10] sm:$0xff]  ;;  %v95_v51 = vrot.slane %v1149_v41, 7  ;;  %v108_v55 = vrot.slane %v1149_v41, 1 }
   0xf   :  { %910 = vmatpush3.msra.mxu1 %v163_v17  ;;  %784 = vmatpush3.msra.mxu0 %v130_v19  ;;  %v156_v40 = vld [vmem:[%s1526_s1 + $0x118] sm:$0xff]  ;;  %v155_v47 = vld [vmem:[%s1526_s1 + $0x110] sm:$0xff]  ;;  %v138_v49 = vld [vmem:[%s1526_s1 + $0x88] sm:$0xff]  ;;  %v109_v56 = vrot.slane %v1162_v44, 1  ;;  %v96_v2 = vrot.slane %v1162_v44, 7 }
  0x10   :  { %911 = vmatprep.subr.mxu1 %v162_v20  ;;  %785 = vmatprep.subr.mxu0 %v145_v21  ;;  %v1154_v42 = vld [vmem:[%s1527_s0 + $0x18] sm:$0xff]  ;;  %v1174_v48 = vld [vmem:[%s1527_s0 + $0x10] sm:$0xff]  ;;  %v122_v53 = vld [vmem:[%s1526_s1 + $0x8] sm:$0xff]  ;;  %s986_s0 = smov 64  }
  0x11   :  { %912 = vmatpush3.msra.mxu1 %v162_v20  ;;  %786 = vmatpush3.msra.mxu0 %v129_v22  ;;  %v98_v52 = vrot.slane %v1154_v42, 7  ;;  %v154_v54 = vld [vmem:[%s1526_s1 + $0x108] sm:$0xff]  ;;  %v137_v57 = vld [vmem:[%s1526_s1 + $0x80] sm:$0xff]  ;;  %v110_v59 = vrot.slane %v1174_v48, 1  ;;  %v111_v62 = vrot.slane %v1154_v42, 1  ;;  %v115_v4 = vsel %vm112_vm1, %v108_v55, %v109_v56  ;;  %v478_v10 = vld [vmem:[%s1528_s2 + $0xf8] sm:$0xff] }
  0x12   :  { %913 = vmatprep.subr.mxu1 %v161_v23  ;;  %787 = vmatprep.subr.mxu0 %v144_v24  ;;  %v121_v61 = vld [vmem:[%s1526_s1] sm:$0xff]  ;;  %v102_v9 = vsel %vm99_vm0, %v95_v51, %v96_v2  ;;  %v97_v11 = vrot.slane %v1174_v48, 7 }
  0x13   :  { %914 = vmatpush3.msra.mxu1 %v161_v23  ;;  %788 = vmatpush3.msra.mxu0 %v128_v25  ;;  %v103_v0 = vsel %vm99_vm0, %v98_v52, %v95_v51  ;;  %v153_v1 = vld [vmem:[%s1526_s1 + $0x100] sm:$0xff]  ;;  %v114_v6 = vsel %vm112_vm1, %v109_v56, %v110_v59  ;;  %v113_v8 = vsel %vm112_vm1, %v110_v59, %v111_v62  ;;  %s983_s1 = smov 8  }
  0x14   :  { %915 = vmatprep.subr.mxu1 %v160_v26  ;;  %789 = vmatprep.subr.mxu0 %v143_v27  ;;  %v116_v13 = vsel %vm112_vm1, %v111_v62, %v108_v55  ;;  %v101_v15 = vsel %vm99_vm0, %v96_v2, %v97_v11  ;;  %v100_v16 = vsel %vm99_vm0, %v97_v11, %v98_v52  ;;  %v462_v11 = vld [vmem:[%s1528_s2 + $0x78] sm:$0xff] }
  0x15   :  { %916 = vmatpush3.msra.mxu1 %v160_v26  ;;  %790 = vmatpush3.msra.mxu0 %v127_v29 }
  0x16   :  { %917 = vmatprep.subr.mxu1 %v159_v30  ;;  %791 = vmatprep.subr.mxu0 %v142_v31 }
  0x17   :  { %918 = vmatpush3.msra.mxu1 %v159_v30  ;;  %792 = vmatpush3.msra.mxu0 %v126_v32 }
  0x18   :  { %919 = vmatprep.subr.mxu1 %v158_v33  ;;  %793 = vmatprep.subr.mxu0 %v141_v34 }
  0x19   :  { %920 = vmatpush3.msra.mxu1 %v158_v33  ;;  %794 = vmatpush3.msra.mxu0 %v125_v36 }
  0x1a   :  { %921 = vmatprep.subr.mxu1 %v157_v37  ;;  %795 = vmatprep.subr.mxu0 %v140_v38 }
  0x1b   :  { %922 = vmatpush3.msra.mxu1 %v157_v37  ;;  %796 = vmatpush3.msra.mxu0 %v124_v39 }
  0x1c   :  { %923 = vmatprep.subr.mxu1 %v156_v40  ;;  %797 = vmatprep.subr.mxu0 %v139_v43 }
  0x1d   :  { %924 = vmatpush3.msra.mxu1 %v156_v40  ;;  %798 = vmatpush3.msra.mxu0 %v123_v46 }
  0x1e   :  { %925 = vmatprep.subr.mxu1 %v155_v47  ;;  %799 = vmatprep.subr.mxu0 %v138_v49 }
  0x1f   :  { %926 = vmatpush3.msra.mxu1 %v155_v47  ;;  %800 = vmatpush3.msra.mxu0 %v122_v53 }
  0x20   :  { %927 = vmatprep.subr.mxu1 %v154_v54  ;;  %801 = vmatprep.subr.mxu0 %v137_v57 }
  0x21   :  { %233 = vmatprep.mubr.f32.mxu0 %v1149_v41  ;;  %802 = vmatpush3.msra.mxu0 %v121_v61 }
  0x22   :  { %928 = vmatpush3.msra.mxu1 %v154_v54  ;;  %761 = vmatmul.mubr.msk.f32.vlgmr.msra.gmra.mxu0 %vm1201_vm2, %v103_v0 }
  0x23   :  { %929 = vmatprep.subr.mxu1 %v153_v1  ;;  %931 = vmatprep.mubr.f32.mxu1 %v115_v4 }
  0x24   :  { %930 = vmatpush3.msra.mxu1 %v153_v1  ;;  %238 = vmatprep.mubr.f32.mxu0 %v1162_v44 }
  0x25   :  { %932 = vmatmul.mubr.msk.f32.vlgmr.msra.gmra.mxu1 %vm1215_vm3, %v114_v6  ;;  %835 = vmatprep.subr.mxu0 %v478_v10  ;;  %v479_v10 = vld [vmem:[%s1528_s2 + $0x100] sm:$0xff] }
  0x26   :  { %934 = vmatprep.mubr.f32.mxu1 %v113_v8  ;;  %239 = vmatmul.mubr.f32.gmra.mxu0 %v102_v9 }
  0x27   :  { %243 = vmatprep.mubr.f32.mxu0 %v1174_v48  ;;  %836 = vmatpush3.msra.mxu0 %v462_v11 }
  0x29   :  { %935 = vmatmul.mubr.msk.f32.gmra.mxu1 %vm1231_vm4, %v116_v13  ;;  %v494_v13 = vld [vmem:[%s1528_s2 + $0x178] sm:$0xff] }
  0x2a   :  { %762 = vmatmul.mubr.msk.f32.gmra.mxu0 %vm1238_vm5, %v101_v15  ;;  %937 = vmatprep.subr.mxu1 %v494_v13 }
  0x2b   :  { %248 = vmatprep.mubr.f32.mxu0 %v1154_v42  ;;  %938 = vmatpush3.msra.mxu1 %v494_v13 }
  0x2e   :  { %249 = vmatmul.mubr.f32.gmra.mxu0 %v100_v16  ;;  %v477_v16 = vld [vmem:[%s1528_s2 + $0xf0] sm:$0xff] }
  0x2f   :  { %837 = vmatprep.subr.mxu0 %v477_v16 }
  0xe2   :  { %v803_v17 = vpop.f32.mrf.mxu0 }
  0xe4   :  { %v804_v18 = vpop.f32.mrf.mxu0 }
  0xe5   :  { %v933_v19 = vpop.f32.mrf.mxu1  ;;  %v805_v24 = vadd.f32 %v804_v18, %v803_v17  ;;  %v461_v18 = vld [vmem:[%s1528_s2 + $0x70] sm:$0xff] }
  0xe6   :  { %v806_v20 = vpop.f32.mrf.mxu0  ;;  %838 = vmatpush3.msra.mxu0 %v461_v18 }
  0xe7   :  { %v320_v21 = vpop.f32.mrf.mxu1 }
  0xe8   :  { %v807_v22 = vpop.f32.mrf.mxu0  ;;  %v1253_v30 = vadd.f32 %v805_v24, %v320_v21  ;;  %v460_v21 = vld [vmem:[%s1528_s2 + $0x68] sm:$0xff]  ;;  %v475_v24 = vld [vmem:[%s1528_s2 + $0xe0] sm:$0xff] }
  0xe9   :  { %v936_v23 = vpop.f32.mrf.mxu1  ;;  %v808_v25 = vadd.f32 %v807_v22, %v806_v20  ;;  %v476_v20 = vld [vmem:[%s1528_s2 + $0xe8] sm:$0xff] }
  0xea   :  { %v809_v26 = vpop.f32.mrf.mxu0  ;;  %v360_v37 = vmul.f32 %v1253_v30, %v1253_v30  ;;  %839 = vmatprep.subr.mxu0 %v476_v20  ;;  %v492_v22 = vld [vmem:[%s1528_s2 + $0x168] sm:$0xff] }
  0xeb   :  { %v1251_v27 = vadd.f32 %v933_v19, %v808_v25  ;;  %v330_v29 = vpop.f32.mrf.mxu1  ;;  %v493_v19 = vld [vmem:[%s1528_s2 + $0x170] sm:$0xff]  ;;  %840 = vmatpush3.msra.mxu0 %v460_v21  ;;  %v459_v25 = vld [vmem:[%s1528_s2 + $0x60] sm:$0xff] }
  0xec   :  { %v810_v28 = vpop.f32.mrf.mxu0  ;;  %939 = vmatprep.subr.mxu1 %v493_v19  ;;  %841 = vmatprep.subr.mxu0 %v475_v24  ;;  %v1432_v24 = vsub.s32 0, %v1129_v35 }
  0xed   :  { %v811_v31 = vadd.f32 %v810_v28, %v809_v26  ;;  %v361_v33 = vmul.f32 %v1251_v27, %v1251_v27  ;;  %v339_v38 = vadd.f32 %v1251_v27, %v1253_v30  ;;  %940 = vmatpush3.msra.mxu1 %v493_v19  ;;  %v491_v26 = vld [vmem:[%s1528_s2 + $0x160] sm:$0xff]  ;;  %842 = vmatpush3.msra.mxu0 %v459_v25 }
  0xee   :  { %v812_v32 = vpop.f32.mrf.mxu0  ;;  %941 = vmatprep.subr.mxu1 %v492_v22 }
  0xef   :  { %v1257_v34 = vadd.f32 %v811_v31, %v330_v29  ;;  %v364_v45 = vadd.f32 %v361_v33, %v360_v37  ;;  %v474_v29 = vld [vmem:[%s1528_s2 + $0xd8] sm:$0xff]  ;;  %942 = vmatpush3.msra.mxu1 %v492_v22  ;;  %v473_v33 = vld [vmem:[%s1528_s2 + $0xd0] sm:$0xff] }
  0xf0   :  { %v813_v36 = vpop.f32.mrf.mxu0  ;;  %v458_v31 = vld [vmem:[%s1528_s2 + $0x58] sm:$0xff]  ;;  %943 = vmatprep.subr.mxu1 %v491_v26  ;;  %843 = vmatprep.subr.mxu0 %v474_v29  ;;  %v489_v37 = vld [vmem:[%s1528_s2 + $0x150] sm:$0xff] }
  0xf1   :  { %v362_v39 = vmul.f32 %v1257_v34, %v1257_v34  ;;  %v814_v40 = vadd.f32 %v813_v36, %v812_v32  ;;  %v340_v43 = vadd.f32 %v339_v38, %v1257_v34  ;;  %v490_v32 = vld [vmem:[%s1528_s2 + $0x158] sm:$0xff]  ;;  %944 = vmatpush3.msra.mxu1 %v491_v26  ;;  %v457_v36 = vld [vmem:[%s1528_s2 + $0x50] sm:$0xff]  ;;  %844 = vmatpush3.msra.mxu0 %v458_v31  ;;  %v472_v38 = vld [vmem:[%s1528_s2 + $0xc8] sm:$0xff] }
  0xf2   :  { %945 = vmatprep.subr.mxu1 %v490_v32  ;;  %845 = vmatprep.subr.mxu0 %v473_v33  ;;  %v91_v26 = vld [vmem:[%s1529_s3] sm:$0x1] }
  0xf3   :  { %v1266_v46 = vadd.f32 %v936_v23, %v814_v40  ;;  %v365_v47 = vadd.f32 %v364_v45, %v362_v39  ;;  %946 = vmatpush3.msra.mxu1 %v490_v32  ;;  %v456_v39 = vld [vmem:[%s1528_s2 + $0x48] sm:$0xff]  ;;  %846 = vmatpush3.msra.mxu0 %v457_v36  ;;  %v455_v45 = vld [vmem:[%s1528_s2 + $0x40] sm:$0xff] }
  0xf4   :  { %v488_v40 = vld [vmem:[%s1528_s2 + $0x148] sm:$0xff]  ;;  %947 = vmatprep.subr.mxu1 %v489_v37  ;;  %847 = vmatprep.subr.mxu0 %v472_v38 }
  0xf5   :  { %v341_v49 = vadd.f32 %v340_v43, %v1266_v46  ;;  %v363_v50 = vmul.f32 %v1266_v46, %v1266_v46  ;;  %v471_v43 = vld [vmem:[%s1528_s2 + $0xc0] sm:$0xff]  ;;  %948 = vmatpush3.msra.mxu1 %v489_v37  ;;  %848 = vmatpush3.msra.mxu0 %v456_v39 }
  0xf6   :  { %949 = vmatprep.subr.mxu1 %v488_v40  ;;  %849 = vmatprep.subr.mxu0 %v471_v43  ;;  %v765_v37 = vld [vmem:[%s1530_s4] ss:$0 sm:$0xff] }
  0xf7   :  { %v366_v51 = vadd.f32 %v365_v47, %v363_v50  ;;  %v342_v52 = vrot.slane %v341_v49, 4  ;;  %v487_v47 = vld [vmem:[%s1528_s2 + $0x140] sm:$0xff]  ;;  %950 = vmatpush3.msra.mxu1 %v488_v40  ;;  %v454_v50 = vld [vmem:[%s1528_s2 + $0x38] sm:$0xff]  ;;  %850 = vmatpush3.msra.mxu0 %v455_v45 }
  0xf8   :  { %951 = vmatprep.subr.mxu1 %v487_v47 }
  0xf9   :  { %v343_v53 = vadd.f32 %v342_v52, %v341_v49  ;;  %v367_v54 = vrot.slane %v366_v51, 4  ;;  %v470_v49 = vld [vmem:[%s1528_s2 + $0xb8] sm:$0xff]  ;;  %v469_v52 = vld [vmem:[%s1528_s2 + $0xb0] sm:$0xff]  ;;  %952 = vmatpush3.msra.mxu1 %v487_v47 }
  0xfa   :  { %851 = vmatprep.subr.mxu0 %v470_v49 }
  0xfb   :  { %v344_v55 = vrot.slane %v343_v53, 2  ;;  %v368_v56 = vadd.f32 %v367_v54, %v366_v51  ;;  %v486_v51 = vld [vmem:[%s1528_s2 + $0x138] sm:$0xff]  ;;  %v485_v54 = vld [vmem:[%s1528_s2 + $0x130] sm:$0xff]  ;;  %852 = vmatpush3.msra.mxu0 %v454_v50 }
  0xfc   :  { %953 = vmatprep.subr.mxu1 %v486_v51  ;;  %853 = vmatprep.subr.mxu0 %v469_v52 }
  0xfd   :  { %v345_v57 = vadd.f32 %v344_v55, %v343_v53  ;;  %v369_v58 = vrot.slane %v368_v56, 2  ;;  %v453_v53 = vld [vmem:[%s1528_s2 + $0x30] sm:$0xff]  ;;  %v468_v55 = vld [vmem:[%s1528_s2 + $0xa8] sm:$0xff]  ;;  %954 = vmatpush3.msra.mxu1 %v486_v51 }
  0xfe   :  { %854 = vmatpush3.msra.mxu0 %v453_v53  ;;  %955 = vmatprep.subr.mxu1 %v485_v54 }
  0xff   :  { %v346_v59 = vrot.slane %v345_v57, 1  ;;  %v370_v60 = vadd.f32 %v369_v58, %v368_v56  ;;  %v452_v56 = vld [vmem:[%s1528_s2 + $0x28] sm:$0xff]  ;;  %v467_v58 = vld [vmem:[%s1528_s2 + $0xa0] sm:$0xff]  ;;  %855 = vmatprep.subr.mxu0 %v468_v55  ;;  %956 = vmatpush3.msra.mxu1 %v485_v54 }
 0x100   :  { %856 = vmatpush3.msra.mxu0 %v452_v56 }
 0x101   :  { %v347_v61 = vadd.f32 %v346_v59, %v345_v57  ;;  %v371_v62 = vrot.slane %v370_v60, 1  ;;  %v484_v57 = vld [vmem:[%s1528_s2 + $0x128] sm:$0xff]  ;;  %v451_v59 = vld [vmem:[%s1528_s2 + $0x20] sm:$0xff]  ;;  %857 = vmatprep.subr.mxu0 %v467_v58 }
 0x102   :  { %957 = vmatprep.subr.mxu1 %v484_v57  ;;  %858 = vmatpush3.msra.mxu0 %v451_v59 }
 0x103   :  { %348 = vrot.lane.b32.xlu0 %v347_v61, %s983_s1  ;;  %v372_v0 = vadd.f32 %v371_v62, %v370_v60  ;;  %v483_v60 = vld [vmem:[%s1528_s2 + $0x120] sm:$0xff]  ;;  %958 = vmatpush3.msra.mxu1 %v484_v57  ;;  %v450_v62 = vld [vmem:[%s1528_s2 + $0x18] sm:$0xff] }
 0x104   :  { %959 = vmatprep.subr.mxu1 %v483_v60 }
 0x105   :  { %960 = vmatpush3.msra.mxu1 %v483_v60 }
 0x107   :  { %373 = vrot.lane.b32.xlu0 %v372_v0, %s983_s1 }
 0x175   :  { %v349_v1 = vpop.permute.xlu0 %348 }
 0x176   :  { %v350_v2 = vadd.f32 %v349_v1, %v347_v61  ;;  %v466_v61 = vld [vmem:[%s1528_s2 + $0x98] sm:$0xff]  ;;  %v465_v1 = vld [vmem:[%s1528_s2 + $0x90] sm:$0xff] }
 0x177   :  { %859 = vmatprep.subr.mxu0 %v466_v61 }
 0x178   :  { %351 = vrot.lane.b32.xlu1 %v350_v2, %s984_s12  ;;  %860 = vmatpush3.msra.mxu0 %v450_v62 }
 0x179   :  { %v374_v3 = vpop.permute.xlu0 %373  ;;  %861 = vmatprep.subr.mxu0 %v465_v1 }
 0x17a   :  { %v375_v4 = vadd.f32 %v374_v3, %v372_v0  ;;  %v482_v0 = vld [vmem:[%s1528_s2 + $0x118] sm:$0xff]  ;;  %v481_v3 = vld [vmem:[%s1528_s2 + $0x110] sm:$0xff] }
 0x17b   :  { %961 = vmatprep.subr.mxu1 %v482_v0 }
 0x17c   :  { %376 = vrot.lane.b32.xlu1 %v375_v4, %s984_s12  ;;  %962 = vmatpush3.msra.mxu1 %v482_v0 }
 0x17d   :  { %963 = vmatprep.subr.mxu1 %v481_v3 }
 0x17e   :  { %964 = vmatpush3.msra.mxu1 %v481_v3 }
 0x1ea   :  { %v352_v6 = vpop.permute.xlu1 %351 }
 0x1eb   :  { %v353_v7 = vadd.f32 %v352_v6, %v350_v2  ;;  %v449_v2 = vld [vmem:[%s1528_s2 + $0x10] sm:$0xff]  ;;  %v448_v6 = vld [vmem:[%s1528_s2 + $0x8] sm:$0xff] }
 0x1ec   :  { %862 = vmatpush3.msra.mxu0 %v449_v2 }
 0x1ed   :  { %354 = vrot.lane.b32.xlu0 %v353_v7, %s985_s13 }
 0x1ee   :  { %v377_v8 = vpop.permute.xlu1 %376 }
 0x1ef   :  { %v378_v9 = vadd.f32 %v377_v8, %v375_v4  ;;  %v464_v4 = vld [vmem:[%s1528_s2 + $0x88] sm:$0xff]  ;;  %v463_v8 = vld [vmem:[%s1528_s2 + $0x80] sm:$0xff] }
 0x1f0   :  { %863 = vmatprep.subr.mxu0 %v464_v4 }
 0x1f1   :  { %379 = vrot.lane.b32.xlu1 %v378_v9, %s985_s13  ;;  %864 = vmatpush3.msra.mxu0 %v448_v6 }
 0x1f2   :  { %865 = vmatprep.subr.mxu0 %v463_v8 }
 0x25f   :  { %v355_v15 = vpop.permute.xlu0 %354 }
 0x260   :  { %v1289_v17 = vadd.f32 %v355_v15, %v353_v7  ;;  %v480_v7 = vld [vmem:[%s1528_s2 + $0x108] sm:$0xff] }
 0x261   :  { %965 = vmatprep.subr.mxu1 %v480_v7 }
 0x262   :  { %357 = vrot.lane.b32.xlu0 %v1289_v17, %s986_s0  ;;  %966 = vmatpush3.msra.mxu1 %v480_v7 }
 0x263   :  { %v380_v23 = vpop.permute.xlu1 %379  ;;  %967 = vmatprep.subr.mxu1 %v479_v10 }
 0x264   :  { %v1317_v28 = vadd.f32 %v380_v23, %v378_v9  ;;  %v447_v9 = vld [vmem:[%s1528_s2] sm:$0xff]  ;;  %968 = vmatpush3.msra.mxu1 %v479_v10 }
 0x265   :  { %866 = vmatpush3.msra.mxu0 %v447_v9 }
 0x266   :  { %382 = vrot.lane.b32.xlu1 %v1317_v28, %s986_s0 }
 0x2d4   :  { %v358_v11 = vpop.permute.xlu0 %357 }
 0x2d5   :  { %v359_v13 = vadd.f32 %v358_v11, %v1289_v17 }
 0x2d7   :  { %v385_v15 = vmul.f32 0.001953125, %v359_v13 }
 0x2d8   :  { %v383_v16 = vpop.permute.xlu1 %382 }
 0x2d9   :  { %v384_v18 = vadd.f32 %v383_v16, %v1317_v28  ;;  %v387_v19 = vmul.f32 %v385_v15, %v385_v15  ;;  %v396_v25 = vrot.slane %v385_v15, %v1432_v24 }
 0x2db   :  { %v386_v20 = vmul.f32 0.001953125, %v384_v18  ;;  %v398_v31 = vsub.f32 %v1251_v27, %v396_v25  ;;  %v399_v28 = vsub.f32 %v1257_v34, %v396_v25  ;;  %v400_v32 = vsub.f32 %v1266_v46, %v396_v25 }
 0x2dc   :  { %v397_v33 = vsub.f32 %v1253_v30, %v396_v25 }
 0x2dd   :  { %v388_v21 = vsub.f32 %v386_v20, %v387_v19 }
 0x2df   :  { %v389_v22 = vmax.f32 %v388_v21, 0.0 }
 0x2e1   :  { %v390_v23 = vadd.f32 1e-05, %v389_v22 }
 0x2e3   :  { %979 = vrsqrt.f32 %v390_v23 }
 0x2f0   :  { %v980_v17 = vpop.eup %979 }
 0x2f1   :  { %v392_v29 = vmul.f32 %v980_v17, %v91_v26 }
 0x2f3   :  { %v404_v36 = vrot.slane %v392_v29, %v1432_v24 }
 0x2f5   :  { %v405_v38 = vmul.f32 %v404_v36, %v397_v33  ;;  %v407_v39 = vmul.f32 %v404_v36, %v399_v28  ;;  %v408_v40 = vmul.f32 %v404_v36, %v400_v32  ;;  %v406_v43 = vmul.f32 %v404_v36, %v398_v31 }
 0x2f7   :  { %v415_v45 = vadd.f32 %v765_v37, %v405_v38  ;;  %v417_v47 = vadd.f32 %v765_v37, %v407_v39  ;;  %v418_v49 = vadd.f32 %v765_v37, %v408_v40  ;;  %v416_v27 = vadd.f32 %v765_v37, %v406_v43 }
 0x2f9   :  { %v419_v50 = vmax.f32 %v415_v45, 0.0  ;;  %v421_v34 = vmax.f32 %v417_v47, 0.0  ;;  %v422_v51 = vmax.f32 %v418_v49, 0.0  ;;  %v420_v46 = vmax.f32 %v416_v27, 0.0 }
 0x2fb   :  { %v423_v52 = vrot.slane %v419_v50, 7  ;;  %559 = vmatprep.mubr.f32.mxu0 %v419_v50  ;;  %v426_v30 = vrot.slane %v422_v51, 7  ;;  %v435_v53 = vrot.slane %v419_v50, 1  ;;  %v436_v54 = vrot.slane %v420_v46, 1 }
 0x2fc   :  { %v437_v55 = vrot.slane %v421_v34, 1  ;;  %v438_v56 = vrot.slane %v422_v51, 1  ;;  %v424_v59 = vrot.slane %v420_v46, 7  ;;  %v425_v0 = vrot.slane %v421_v34, 7 }
 0x2fd   :  { %v430_v57 = vsel %vm99_vm0, %v426_v30, %v423_v52  ;;  %v441_v58 = vsel %vm112_vm1, %v435_v53, %v436_v54 }
 0x2fe   :  { %766 = vmatmul.mubr.msk.f32.vlgmr.msra.gmra.mxu0 %vm1201_vm2, %v430_v57  ;;  %969 = vmatprep.mubr.f32.mxu1 %v441_v58  ;;  %v440_v60 = vsel %vm112_vm1, %v436_v54, %v437_v55  ;;  %v439_v61 = vsel %vm112_vm1, %v437_v55, %v438_v56  ;;  %v429_v62 = vsel %vm99_vm0, %v423_v52, %v424_v59 }
 0x2ff   :  { %564 = vmatprep.mubr.f32.mxu0 %v420_v46  ;;  %970 = vmatmul.mubr.msk.f32.vlgmr.msra.gmra.mxu1 %vm1215_vm3, %v440_v60  ;;  %v442_v63 = vsel %vm112_vm1, %v438_v56, %v435_v53  ;;  %v428_v5 = vsel %vm99_vm0, %v424_v59, %v425_v0  ;;  %v427_v1 = vsel %vm99_vm0, %v425_v0, %v426_v30 }
 0x300   :  { %972 = vmatprep.mubr.f32.mxu1 %v439_v61 }
 0x302   :  { %565 = vmatmul.mubr.f32.gmra.mxu0 %v429_v62 }
 0x303   :  { %569 = vmatprep.mubr.f32.mxu0 %v421_v34  ;;  %973 = vmatmul.mubr.msk.f32.gmra.mxu1 %vm1231_vm4, %v442_v63 }
 0x306   :  { %767 = vmatmul.mubr.msk.f32.gmra.mxu0 %vm1238_vm5, %v428_v5 }
 0x307   :  { %574 = vmatprep.mubr.f32.mxu0 %v422_v51 }
 0x30a   :  { %575 = vmatmul.mubr.f32.gmra.mxu0 %v427_v1 }
 0x3be   :  { %v867_v2 = vpop.f32.mrf.mxu0 }
 0x3bf   :  { %v971_v3 = vpop.f32.mrf.mxu1 }
 0x3c0   :  { %v868_v4 = vpop.f32.mrf.mxu0 }
 0x3c1   :  { %v646_v6 = vpop.f32.mrf.mxu1  ;;  %v869_v9 = vadd.f32 %v868_v4, %v867_v2 }
 0x3c2   :  { %v870_v7 = vpop.f32.mrf.mxu0 }
 0x3c3   :  { %v974_v10 = vpop.f32.mrf.mxu1  ;;  %v1472_v14 = vadd.f32 %v869_v9, %v646_v6  ;;  %v93_v9 = vld [vmem:[%s1531_s5] sm:$0x1] }
 0x3c4   :  { %v871_v8 = vpop.f32.mrf.mxu0 }
 0x3c5   :  { %v872_v12 = vadd.f32 %v871_v8, %v870_v7  ;;  %v656_v18 = vpop.f32.mrf.mxu1  ;;  %v686_v22 = vmul.f32 %v1472_v14, %v1472_v14 }
 0x3c6   :  { %v873_v11 = vpop.f32.mrf.mxu0 }
 0x3c7   :  { %v1470_v13 = vadd.f32 %v971_v3, %v872_v12 }
 0x3c8   :  { %v874_v15 = vpop.f32.mrf.mxu0 }
 0x3c9   :  { %v875_v16 = vadd.f32 %v874_v15, %v873_v11  ;;  %v687_v19 = vmul.f32 %v1470_v13, %v1470_v13  ;;  %v665_v23 = vadd.f32 %v1470_v13, %v1472_v14 }
 0x3ca   :  { %v876_v35 = vpop.f32.mrf.mxu0 }
 0x3cb   :  { %v1476_v20 = vadd.f32 %v875_v16, %v656_v18  ;;  %v690_v17 = vadd.f32 %v687_v19, %v686_v22  ;;  %v770_v19 = vld [vmem:[%s1532_s6] ss:$0 sm:$0xff] }
 0x3cc   :  { %v877_v21 = vpop.f32.mrf.mxu0 }
 0x3cd   :  { %v688_v25 = vmul.f32 %v1476_v20, %v1476_v20  ;;  %v878_v26 = vadd.f32 %v877_v21, %v876_v35  ;;  %v666_v29 = vadd.f32 %v665_v23, %v1476_v20 }
 0x3cf   :  { %v1485_v31 = vadd.f32 %v974_v10, %v878_v26  ;;  %v691_v28 = vadd.f32 %v690_v17, %v688_v25 }
 0x3d1   :  { %v667_v32 = vadd.f32 %v666_v29, %v1485_v31  ;;  %v689_v33 = vmul.f32 %v1485_v31, %v1485_v31 }
 0x3d3   :  { %v668_v36 = vrot.slane %v667_v32, 4  ;;  %v692_v37 = vadd.f32 %v691_v28, %v689_v33 }
 0x3d5   :  { %v669_v38 = vadd.f32 %v668_v36, %v667_v32  ;;  %v693_v39 = vrot.slane %v692_v37, 4 }
 0x3d7   :  { %v670_v40 = vrot.slane %v669_v38, 2  ;;  %v694_v43 = vadd.f32 %v693_v39, %v692_v37 }
 0x3d9   :  { %v671_v45 = vadd.f32 %v670_v40, %v669_v38  ;;  %v695_v47 = vrot.slane %v694_v43, 2 }
 0x3db   :  { %v672_v49 = vrot.slane %v671_v45, 1  ;;  %v696_v27 = vadd.f32 %v695_v47, %v694_v43 }
 0x3dd   :  { %v673_v50 = vadd.f32 %v672_v49, %v671_v45  ;;  %v697_v34 = vrot.slane %v696_v27, 1 }
 0x3df   :  { %674 = vrot.lane.b32.xlu0 %v673_v50, %s983_s1  ;;  %v698_v51 = vadd.f32 %v697_v34, %v696_v27 }
 0x3e1   :  { %699 = vrot.lane.b32.xlu1 %v698_v51, %s983_s1 }
 0x451   :  { %v675_v46 = vpop.permute.xlu0 %674 }
 0x452   :  { %v676_v52 = vadd.f32 %v675_v46, %v673_v50 }
 0x453   :  { %v700_v30 = vpop.permute.xlu1 %699 }
 0x454   :  { %v701_v53 = vadd.f32 %v700_v30, %v698_v51  ;;  %677 = vrot.lane.b32.xlu0 %v676_v52, %s984_s12 }
 0x456   :  { %702 = vrot.lane.b32.xlu1 %v701_v53, %s984_s12 }
 0x4c6   :  { %v678_v54 = vpop.permute.xlu0 %677 }
 0x4c7   :  { %v679_v55 = vadd.f32 %v678_v54, %v676_v52 }
 0x4c8   :  { %v703_v56 = vpop.permute.xlu1 %702 }
 0x4c9   :  { %v704_v57 = vadd.f32 %v703_v56, %v701_v53  ;;  %680 = vrot.lane.b32.xlu0 %v679_v55, %s985_s13 }
 0x4cb   :  { %705 = vrot.lane.b32.xlu1 %v704_v57, %s985_s13 }
 0x53b   :  { %v681_v58 = vpop.permute.xlu0 %680 }
 0x53c   :  { %v682_v59 = vadd.f32 %v681_v58, %v679_v55 }
 0x53d   :  { %v706_v60 = vpop.permute.xlu1 %705 }
 0x53e   :  { %v707_v61 = vadd.f32 %v706_v60, %v704_v57  ;;  %683 = vrot.lane.b32.xlu0 %v682_v59, %s986_s0 }
 0x540   :  { %708 = vrot.lane.b32.xlu1 %v707_v61, %s986_s0 }
 0x5b0   :  { %v684_v62 = vpop.permute.xlu0 %683 }
 0x5b1   :  { %v685_v0 = vadd.f32 %v684_v62, %v682_v59 }
 0x5b2   :  { %v709_v63 = vpop.permute.xlu1 %708 }
 0x5b3   :  { %v711_v5 = vmul.f32 0.001953125, %v685_v0  ;;  %v710_v1 = vadd.f32 %v709_v63, %v707_v61 }
 0x5b5   :  { %v713_v2 = vmul.f32 %v711_v5, %v711_v5  ;;  %v712_v3 = vmul.f32 0.001953125, %v710_v1  ;;  %v722_v8 = vrot.slane %v711_v5, %v1432_v24 }
 0x5b7   :  { %v714_v4 = vsub.f32 %v712_v3, %v713_v2  ;;  %v723_v11 = vsub.f32 %v1472_v14, %v722_v8  ;;  %v724_v15 = vsub.f32 %v1470_v13, %v722_v8  ;;  %v725_v16 = vsub.f32 %v1476_v20, %v722_v8 }
 0x5b8   :  { %v726_v18 = vsub.f32 %v1485_v31, %v722_v8 }
 0x5b9   :  { %v715_v6 = vmax.f32 %v714_v4, 0.0 }
 0x5bb   :  { %v716_v7 = vadd.f32 1e-05, %v715_v6 }
 0x5bd   :  { %981 = vrsqrt.f32 %v716_v7 }
 0x5ca   :  { %v982_v12 = vpop.eup %981 }
 0x5cb   :  { %v718_v10 = vmul.f32 %v982_v12, %v93_v9 }
 0x5cd   :  { %v730_v35 = vrot.slane %v718_v10, %v1432_v24 }
 0x5cf   :  { %v731_v21 = vmul.f32 %v730_v35, %v723_v11  ;;  %v732_v22 = vmul.f32 %v730_v35, %v724_v15  ;;  %v733_v23 = vmul.f32 %v730_v35, %v725_v16  ;;  %v734_v25 = vmul.f32 %v730_v35, %v726_v18 }
 0x5d1   :  { %v741_v26 = vadd.f32 %v770_v19, %v731_v21  ;;  %v742_v17 = vadd.f32 %v770_v19, %v732_v22  ;;  %v743_v29 = vadd.f32 %v770_v19, %v733_v23  ;;  %v744_v14 = vadd.f32 %v770_v19, %v734_v25 }
 0x5d3   :  { %v745_v13 = vadd.f32 %v741_v26, %v1149_v41  ;;  %v746_v20 = vadd.f32 %v742_v17, %v1162_v44  ;;  %v747_v31 = vadd.f32 %v743_v29, %v1174_v48  ;;  %v748_v24 = vadd.f32 %v744_v14, %v1154_v42 }
 0x5d5   :  { %v749_v28 = vmax.f32 %v745_v13, 0.0  ;;  %v750_v32 = vmax.f32 %v746_v20, 0.0  ;;  %v751_v33 = vmax.f32 %v747_v31, 0.0  ;;  %v752_v36 = vmax.f32 %v748_v24, 0.0 }
 0x5d7   :  { %753 = vst [vmem:[%s1533_s7] sm:$0xff] %v749_v28  ;;  %754 = vst [vmem:[%s1533_s7 + $0x8] sm:$0xff] %v750_v32 }
 0x5d8   :  { %755 = vst [vmem:[%s1533_s7 + $0x10] sm:$0xff] %v751_v33  ;;  %756 = vst [vmem:[%s1533_s7 + $0x18] sm:$0xff] %v752_v36 }

</bundles_post_ra>
